<compile_context>
chip_gen: v6e
topology: v6e:2x2x1
jax: 0.10.0
libtpu: 0.0.40
codegen_flags: <defaults>
</compile_context>

<pallas_src>
import functools

import jax
import jax.numpy as jnp
from jax.experimental import pallas as pl
from jax.experimental.pallas import tpu as pltpu


def _round_up(x, m):
    return ((x + m - 1) // m) * m


def _pick_block_b(B):
    # Largest small divisor of B that still leaves >= 2 grid steps
    # (keeps both v7x TensorCores busy via the "parallel" grid axis).
    for bb in (8, 4, 2):
        if B % bb == 0 and (B // bb) >= 2:
            return bb
    return 1


def _kernel(x_ref, wc_ref, bc_ref, wi_ref, bi_ref, o_ref, *, window_size):
    # x_ref : (Bb, S, Dp)       hidden states (compute dtype), Dp = pad128(D)
    # wc_ref: (W*Dp, Dp)        im2col-flattened conv weight (compute dtype)
    # bc_ref: (1, Dp)           conv bias (f32, zero-padded)
    # wi_ref: (Dp, NIp)         intent linear weight (compute dtype, zero-padded)
    # bi_ref: (1, NIp)          intent linear bias (f32, zero-padded)
    # o_ref : (Bb, T, NIp)      per-window intent logits (f32), T = S - W + 1
    T = o_ref.shape[1]

    x = x_ref[...]                             # (Bb, S, Dp)
    wc = wc_ref[...]
    wi = wi_ref[...]
    bc = bc_ref[...]                           # (1, Dp)
    bi = bi_ref[...]                           # (1, NIp)

    # im2col: lhs[b, t, w*Dp + d] = x[b, t + w, d]  ->  single K = W*Dp matmul.
    lhs = jnp.concatenate(
        [x[:, w:w + T, :] for w in range(window_size)], axis=-1)   # (Bb, T, W*Dp)

    conv = jnp.einsum("btk,ko->bto", lhs, wc,
                      preferred_element_type=jnp.float32)          # (Bb, T, Dp) f32
    # ReLU; the MLPAdapter LeakyReLU(0.2) is the identity on >= 0 -> dropped.
    conved = jnp.maximum(conv + bc[None], 0.0)
    act = conved.astype(wi.dtype)
    logits = jnp.einsum("bto,oi->bti", act, wi,
                        preferred_element_type=jnp.float32) + bi[None]
    o_ref[...] = logits.astype(o_ref.dtype)                         # (Bb, T, NIp)


def window_conv_intent_decoder(hidden, seq_lens, params, *, window_size,
                               compute_dtype=jnp.bfloat16, block_b=None):
    """hidden: (B, S, D) float32, seq_lens: (B,) int32."""
    B, S, D = hidden.shape
    T = S - window_size + 1
    wc, bc, wi, bi = params["wc"], params["bc"], params["wi"], params["bi"]
    NI = wi.shape[1]

    Dp = _round_up(D, 128)
    NIp = _round_up(NI, 128)

    if block_b is None:
        block_b = _pick_block_b(B)
    assert B % block_b == 0, "block_b must divide B"

    # ---- wrapper-side layout plumbing (all zero-padding -> exact results) ----
    if Dp != D:
        hidden_p = jnp.pad(hidden, ((0, 0), (0, 0), (0, Dp - D)))
    else:
        hidden_p = hidden
    # Conv weight (W, D_in, D_out) -> zero-pad both feature dims -> im2col flatten.
    wc_p = jnp.zeros((window_size, Dp, Dp), wc.dtype).at[:, :D, :D].set(wc)
    wc_flat = wc_p.reshape(window_size * Dp, Dp)
    bc_p = jnp.zeros((1, Dp), jnp.float32).at[:, :D].set(bc.astype(jnp.float32))
    # Intent head: lane-pad NI so output stores are full-vreg; slice outside.
    wi_p = jnp.zeros((Dp, NIp), wi.dtype).at[:D, :NI].set(wi)
    bi_p = jnp.zeros((1, NIp), jnp.float32).at[:, :NI].set(bi.astype(jnp.float32))

    x_c = hidden_p.astype(compute_dtype)
    wc_c = wc_flat.astype(compute_dtype)
    wi_c = wi_p.astype(compute_dtype)

    kernel = functools.partial(_kernel, window_size=window_size)

    pred_padded = pl.pallas_call(
        kernel,
        out_shape=jax.ShapeDtypeStruct((B, T, NIp), jnp.float32),
        grid_spec=pltpu.PrefetchScalarGridSpec(
            num_scalar_prefetch=0,
            grid=(B // block_b,),
            in_specs=[
                pl.BlockSpec((block_b, S, Dp), lambda b: (b, 0, 0)),      # hidden
                pl.BlockSpec((window_size * Dp, Dp), lambda b: (0, 0)),   # conv W (im2col)
                pl.BlockSpec((1, Dp), lambda b: (0, 0)),                  # conv bias
                pl.BlockSpec((Dp, NIp), lambda b: (0, 0)),                # intent W
                pl.BlockSpec((1, NIp), lambda b: (0, 0)),                 # intent bias
            ],
            out_specs=pl.BlockSpec((block_b, T, NIp), lambda b: (b, 0, 0)),
        ),
        compiler_params=pltpu.CompilerParams(
            dimension_semantics=("parallel",),
            vmem_limit_bytes=32 * 1024 * 1024,
        ),
    )(x_c, wc_c, bc_p, wi_c, bi_p)

    pred_intent = pred_padded[:, :, :NI]

    window_num = seq_lens - window_size + 1
    window_num = jnp.where(window_num <= 0, 1, window_num)
    return {"hidden": pred_intent, "window_num": window_num, "seq_lens": seq_lens}


def _reference(hidden, params, *, window_size, alpha=0.2):
    """Pure-JAX f32 reference of the same forward (conv branch)."""
    B, S, D = hidden.shape
    T = S - window_size + 1
    wc, bc, wi, bi = params["wc"], params["bc"], params["wi"], params["bi"]
    conv = jnp.zeros((B, T, D), jnp.float32)
    for w in range(window_size):
        conv = conv + jnp.einsum("btd,do->bto", hidden[:, w:w + T, :], wc[w])
    conv = jnp.maximum(conv + bc[None], 0.0)              # ReLU
    act = jnp.where(conv > 0, conv, alpha * conv)         # LeakyReLU (identity here)
    return act @ wi + bi[None]


def init_params(key, input_dim, num_intent, window_size):
    k1, k2, k3, k4 = jax.random.split(key, 4)
    # PyTorch Conv2d weight shape: (out=D, in=1, kH=W, kW=D); stored as (W, D_in, D_out).
    wc_torch = 0.1 * jax.random.normal(k1, (input_dim, 1, window_size, input_dim), jnp.float32)
    wc = jnp.transpose(wc_torch[:, 0, :, :], (1, 2, 0))
    bc = 0.1 * jax.random.normal(k2, (1, input_dim), jnp.float32)
    # nn.Linear(input_dim, num_intent): weight (NI, D) -> stored transposed (D, NI).
    wi = 0.1 * jax.random.normal(k3, (input_dim, num_intent), jnp.float32)
    bi = 0.1 * jax.random.normal(k4, (1, num_intent), jnp.float32)
    return {"wc": wc, "bc": bc, "wi": wi, "bi": bi}


if __name__ == "__main__":
    B, S, D = 2, 16, 32
    window_size = 3
    num_intent = 8

    key = jax.random.PRNGKey(0)
    kx, kp = jax.random.split(key)
    hidden = jax.random.normal(kx, (B, S, D), jnp.float32)
    seq_lens = jnp.array([16, 10], dtype=jnp.int32)
    params = init_params(kp, D, num_intent, window_size)

    ref = _reference(hidden, params, window_size=window_size)

    # f32 path: exact check against the reference.
    out32 = window_conv_intent_decoder(
        hidden, seq_lens, params, window_size=window_size, compute_dtype=jnp.float32)
    jax.block_until_ready(out32["hidden"])
    assert out32["hidden"].shape == (B, S - window_size + 1, num_intent)
    assert jnp.allclose(out32["hidden"], ref, atol=1e-3, rtol=1e-3)

    # bf16 path (default, perf config): loose tolerance.
    out16 = window_conv_intent_decoder(
        hidden, seq_lens, params, window_size=window_size)
    jax.block_until_ready(out16["hidden"])
    assert out16["hidden"].shape == (B, S - window_size + 1, num_intent)
    assert jnp.allclose(out16["hidden"], ref, atol=1e-1, rtol=5e-2)

    assert bool(jnp.all(out16["window_num"] == jnp.maximum(seq_lens - window_size + 1, 1)))
    assert bool(jnp.all(out16["seq_lens"] == seq_lens))

    print("KERNEL_OK")
</pallas_src>

<mosaic_0001>
module attributes {stable_mosaic.version = 11 : i64} {
  func.func @_kernel(%arg0: i32, %arg1: memref<1x16x128xf32, #tpu.memory_space<vmem>>, %arg2: memref<384x128xf32, #tpu.memory_space<vmem>>, %arg3: memref<1x128xf32, #tpu.memory_space<vmem>>, %arg4: memref<128x128xf32, #tpu.memory_space<vmem>>, %arg5: memref<1x128xf32, #tpu.memory_space<vmem>>, %arg6: memref<1x14x128xf32, #tpu.memory_space<vmem>>) attributes {dimension_semantics = [#tpu.dimension_semantics<parallel>], iteration_bounds = array<i64: 2>, scalar_prefetch = 0 : i64, scratch_operands = 0 : i64, tpu.core_type = #tpu.core_type<tc>, window_params = [{transform_indices = @transform_0, window_bounds = array<i64: 1, 16, 128>}, {pipeline_mode = #tpu.pipeline_mode<synchronous>, transform_indices = @transform_1, window_bounds = array<i64: 384, 128>}, {pipeline_mode = #tpu.pipeline_mode<synchronous>, transform_indices = @transform_2, window_bounds = array<i64: 1, 128>}, {pipeline_mode = #tpu.pipeline_mode<synchronous>, transform_indices = @transform_3, window_bounds = array<i64: 128, 128>}, {pipeline_mode = #tpu.pipeline_mode<synchronous>, transform_indices = @transform_4, window_bounds = array<i64: 1, 128>}, {transform_indices = @transform_5, window_bounds = array<i64: 1, 14, 128>}]} {
    %c0 = arith.constant 0 : index
    %c0_0 = arith.constant 0 : index
    %c0_1 = arith.constant 0 : index
    %0 = vector.load %arg1[%c0, %c0_0, %c0_1] : memref<1x16x128xf32, #tpu.memory_space<vmem>>, vector<1x16x128xf32>
    %c0_2 = arith.constant 0 : index
    %c0_3 = arith.constant 0 : index
    %1 = vector.load %arg2[%c0_2, %c0_3] : memref<384x128xf32, #tpu.memory_space<vmem>>, vector<384x128xf32>
    %c0_4 = arith.constant 0 : index
    %c0_5 = arith.constant 0 : index
    %2 = vector.load %arg4[%c0_4, %c0_5] : memref<128x128xf32, #tpu.memory_space<vmem>>, vector<128x128xf32>
    %c0_6 = arith.constant 0 : index
    %c0_7 = arith.constant 0 : index
    %3 = vector.load %arg3[%c0_6, %c0_7] : memref<1x128xf32, #tpu.memory_space<vmem>>, vector<1x128xf32>
    %c0_8 = arith.constant 0 : index
    %c0_9 = arith.constant 0 : index
    %4 = vector.load %arg5[%c0_8, %c0_9] : memref<1x128xf32, #tpu.memory_space<vmem>>, vector<1x128xf32>
    %5 = vector.extract_strided_slice %0 {offsets = [0, 0, 0], sizes = [1, 14, 128], strides = [1, 1, 1]} : vector<1x16x128xf32> to vector<1x14x128xf32>
    %6 = vector.extract_strided_slice %0 {offsets = [0, 1, 0], sizes = [1, 14, 128], strides = [1, 1, 1]} : vector<1x16x128xf32> to vector<1x14x128xf32>
    %7 = vector.extract_strided_slice %0 {offsets = [0, 2, 0], sizes = [1, 14, 128], strides = [1, 1, 1]} : vector<1x16x128xf32> to vector<1x14x128xf32>
    %8 = tpu.concatenate %5, %6, %7 in 2 : vector<1x14x128xf32>, vector<1x14x128xf32>, vector<1x14x128xf32> -> vector<1x14x384xf32>
    "tpu.trace_start"() <{level = 10 : i32, message = "btk,ko->bto"}> : () -> ()
    %cst = arith.constant dense<0.000000e+00> : vector<1x14x128xf32>
    %9 = tpu.matmul %8, %1, %cst {dimension_numbers = #tpu.dot_dimension_numbers<[2], [0], [0, 1], [1], [0, 0, 0, 1, 1, 1], [], []>} : vector<1x14x384xf32>, vector<384x128xf32>, vector<1x14x128xf32> -> vector<1x14x128xf32>
    "tpu.trace_stop"() : () -> ()
    %10 = vector.shape_cast %3 : vector<1x128xf32> to vector<1x1x128xf32>
    %11 = vector.broadcast %10 : vector<1x1x128xf32> to vector<1x14x128xf32>
    %12 = arith.addf %9, %11 : vector<1x14x128xf32>
    %cst_10 = arith.constant 0.000000e+00 : f32
    %13 = vector.broadcast %cst_10 : f32 to vector<1x14x128xf32>
    %14 = arith.maximumf %12, %13 : vector<1x14x128xf32>
    "tpu.trace_start"() <{level = 10 : i32, message = "bto,oi->bti"}> : () -> ()
    %cst_11 = arith.constant dense<0.000000e+00> : vector<1x14x128xf32>
    %15 = tpu.matmul %14, %2, %cst_11 {dimension_numbers = #tpu.dot_dimension_numbers<[2], [0], [0, 1], [1], [0, 0, 0, 1, 1, 1], [], []>} : vector<1x14x128xf32>, vector<128x128xf32>, vector<1x14x128xf32> -> vector<1x14x128xf32>
    "tpu.trace_stop"() : () -> ()
    %16 = vector.shape_cast %4 : vector<1x128xf32> to vector<1x1x128xf32>
    %17 = vector.broadcast %16 : vector<1x1x128xf32> to vector<1x14x128xf32>
    %18 = arith.addf %15, %17 : vector<1x14x128xf32>
    %c0_12 = arith.constant 0 : index
    %c0_13 = arith.constant 0 : index
    %c0_14 = arith.constant 0 : index
    %19 = vector.load %arg6[%c0_12, %c0_13, %c0_14] : memref<1x14x128xf32, #tpu.memory_space<vmem>>, vector<1x14x128xf32>
    tpu.vector_store %arg6[%c0_12, %c0_13, %c0_14], %18 {strides = array<i32>} : memref<1x14x128xf32, #tpu.memory_space<vmem>>, vector<1x14x128xf32>,
    return
  }
  func.func @transform_0(%arg0: i32) -> (i32, i32, i32) {
    %c0_i32 = arith.constant 0 : i32
    %c0_i32_0 = arith.constant 0 : i32
    %c0_i32_1 = arith.constant 0 : i32
    return %arg0, %c0_i32, %c0_i32_0 : i32, i32, i32
  }
  func.func @transform_1(%arg0: i32) -> (i32, i32) {
    %c0_i32 = arith.constant 0 : i32
    %c0_i32_0 = arith.constant 0 : i32
    %c0_i32_1 = arith.constant 0 : i32
    return %c0_i32, %c0_i32_0 : i32, i32
  }
  func.func @transform_2(%arg0: i32) -> (i32, i32) {
    %c0_i32 = arith.constant 0 : i32
    %c0_i32_0 = arith.constant 0 : i32
    %c0_i32_1 = arith.constant 0 : i32
    return %c0_i32, %c0_i32_0 : i32, i32
  }
  func.func @transform_3(%arg0: i32) -> (i32, i32) {
    %c0_i32 = arith.constant 0 : i32
    %c0_i32_0 = arith.constant 0 : i32
    %c0_i32_1 = arith.constant 0 : i32
    return %c0_i32, %c0_i32_0 : i32, i32
  }
  func.func @transform_4(%arg0: i32) -> (i32, i32) {
    %c0_i32 = arith.constant 0 : i32
    %c0_i32_0 = arith.constant 0 : i32
    %c0_i32_1 = arith.constant 0 : i32
    return %c0_i32, %c0_i32_0 : i32, i32
  }
  func.func @transform_5(%arg0: i32) -> (i32, i32, i32) {
    %c0_i32 = arith.constant 0 : i32
    %c0_i32_0 = arith.constant 0 : i32
    %c0_i32_1 = arith.constant 0 : i32
    return %arg0, %c0_i32, %c0_i32_0 : i32, i32, i32
  }
}

</mosaic_0001>

<bundles_post_ra>
// kernel: tpu_custom_call.1
= control target key start
LH: loop header
LB: loop body
LE: loop exit
PB: predicated region body
PF: predicated region fallthrough
CT: control target
= control target key end

     0   :  { %10 = vsyncpa [#allocation3], 0  ;;  %s1223_s0 = inlined_call_operand.hbm [shape: f32[2,16,128], index: 0, kind: input, shape index: {}]   ;;  %s1224_s1 = inlined_call_operand.hbm [shape: f32[384,128], index: 1, kind: input, shape index: {}]   ;;  %s1225_s2 = inlined_call_operand.vmem [shape: f32[1,128], index: 2, kind: input, shape index: {}]   ;;  %s1226_s3 = inlined_call_operand.hbm [shape: f32[128,128], index: 3, kind: input, shape index: {}]   ;;  %s1227_s4 = inlined_call_operand.vmem [shape: f32[1,128], index: 4, kind: input, shape index: {}]   ;;  %s1228_s5 = inlined_call_operand.vmem [shape: f32[2,14,128], index: 5, kind: output, shape index: {}]  }
   0x1   :  { %12 = vsyncpa [#allocation3 + $0x1], 0 }
   0x2   :  { %13 = vsyncpa [#allocation5], 0  ;;  %s1064_s18 = smov 0   ;;  %s1066_s19 = smov 0  }
   0x3   :  { %s1068_s20 = smov 0   ;;  %s1070_s21 = smov 0  }
   0x4 LB: > { %s1083_s22 = sadd.s32 4294967295, %s1027_s21   ;;  %p39_p0 = scmp.ne.s32.totalorder %s1019_s19, %s1015_s18  ;;  %s1027_s21 = sphi %s1070_s21, %s1243_s21   ;;  %s1023_s20 = sphi %s1068_s20, %s1242_s20   ;;  %s1019_s19 = sphi %s1066_s19, %s1241_s19   ;;  %s1015_s18 = sphi %s1064_s18, %s1240_s18  }
   0x5   : > { %p1229_p1 = scmp.eq.s32.totalorder %s1083_s22, 0  ;;  %p684_p2 = scmp.ge.s32.totalorder %s1027_s21, 1 }
   0x6   : > { %p160_p3 = scmp.lt.s32.totalorder %s1027_s21, 3  ;;  %s1029_s25 = smov [#allocation4]  }
   0x7   : > { %p1091_p4 = por %p1229_p1, %p39_p0  ;;  %s172_s26 = sshll.u32 %s1029_s25, 4  ;;  %s173_s26 = int_to_ptr.vmem [resolvable:$true] %s172_s26 }
   0x8   : > { %p1095_p5 = pnand %p684_p2, %p160_p3  ;;  %s1030_s28 = smov [#allocation6]  }
   0x9   : > { %s1232_s23 = scalar_select %p1091_p4, 1, 0 }
   0xa   : > { %s1233_s24 = scalar_select %p1095_p5, 1, 0 }
   0xb   : > { %p857_p6 = pneg %p1095_p5  ;;  %s188_s29 = sshll.u32 %s1030_s28, 4  ;;  %s189_s29 = int_to_ptr.vmem [resolvable:$true] %s188_s29 }
   0xc   : > { %s920_s30 = scalar_lea.vmem %s173_s26, 6144  ;;  %p928_p12 = scmp.lt.s32.totalorder %s173_s26, %s173_s26 }
   0xd   : > { %p1103_p7 = pnand %p857_p6, %p1229_p1  ;;  %p921_p9 = scmp.ne.s32.totalorder %s173_s26, %s920_s30 }
   0xe   : > { %p929_p13 = scmp.lt.s32.totalorder %s920_s30, %s920_s30 }
   0xf   : > { %p911_p8 = pneg %p1103_p7 }
  0x10   : > { %p930_p0 = por %p929_p13, %p928_p12 }
  0x11   : > { %p923_p10 = pnand %p921_p9, %p911_p8 }
  0x13   : > { %p924_p11 = pneg %p923_p10 }
  0x15   : > { %p931_p2 = pnand %p930_p0, %p924_p11 }
  0x17   : > { %934 = shalt.err (!%p931_p2)
}
  0x18   : > { %s1031_s6 = smov 128   ;;  %s1032_s7 = smov 8  }
  0x19   : > { %860 = dma.hbm_to_vmem [thread:$0]  (!%p1103_p7), %s1224_s1, 6144, %s173_s26, [#allocation5], %s1031_s6, %s1031_s6, %s1032_s7  }
  0x1a   : > { %s946_s10 = scalar_lea.vmem %s189_s29, 2048  ;;  %p954_p10 = scmp.lt.s32.totalorder %s189_s29, %s189_s29 }
  0x1b   : > { %p947_p3 = scmp.ne.s32.totalorder %s189_s29, %s946_s10  ;;  %p955_p11 = scmp.lt.s32.totalorder %s946_s10, %s946_s10 }
  0x1d   : > { %p949_p6 = pnand %p947_p3, %p911_p8  ;;  %p956_p12 = por %p955_p11, %p954_p10 }
  0x1f   : > { %p950_p9 = pneg %p949_p6 }
  0x21   : > { %p957_p13 = pnand %p956_p12, %p950_p9 }
  0x23   : > { %960 = shalt.err (!%p957_p13)
}
  0x24   : > { %863 = dma.hbm_to_vmem [thread:$0]  (!%p1103_p7), %s1226_s3, 2048, %s189_s29, [#allocation5], %s1031_s6, %s1031_s6, %s1032_s7  }
  0x25   : > { %s1132_s13 = sadd.s32 1, %s1027_s21   ;;  %s26_s14 = sadd.s32 1, %s1023_s20 }
  0x26   : > { %s23_s15 = ssub.s32 %s1027_s21, %s1132_s13  ;;  %p33_p8 = scmp.ne.s32.totalorder %s1023_s20, %s1019_s19 }
  0x27   : > { %p24_p0 = scmp.eq.s32.totalorder %s23_s15, 0  ;;  %p34_p2 = scmp.eq.s32.totalorder %s1027_s21, 0 }
  0x28   : > { %p870_p3 = scmp.lt.s32.totalorder %s1027_s21, 2  ;;  %s205_s16 = sand.u32 1, %s1023_s20  }
  0x29   : > { %s1143_s17 = scalar_select %p24_p0, %s1023_s20, %s26_s14  }
  0x2a   : > { %p35_p6 = por %p34_p2, %p33_p8  ;;  %s688_s18 = sshll.u32 %s205_s16, 4 }
  0x2b   : > { %s701_s25 = sshll.u32 %s1027_s21, 8  ;;  %s209_s29 = scalar_lea.vmem [#allocation2], %s688_s18 }
  0x2c   : > { %s1149_s28 = scalar_lea.hbm %s1223_s0, %s701_s25  ;;  %s216_s30 = sshll.u32 %s209_s29, 4  ;;  %s1155_s30 = int_to_ptr.vmem [resolvable:$true] %s216_s30 }
  0x2d   : > { %p1151_p7 = pnand %p870_p3, %p35_p6  ;;  %s1157_s9 = scalar_lea.sflag [#allocation3], %s205_s16 }
  0x2e   : > { %s961_s21 = scalar_lea.hbm %s1149_s28, 256  ;;  %s966_s12 = scalar_lea.hbm %s1223_s0, 512 }
  0x2f   : > { %p962_p9 = scmp.ne.s32.totalorder %s1149_s28, %s961_s21  ;;  %p963_p10 = pneg %p1151_p7 }
  0x30   : > { %p967_p13 = scmp.lt.s32.totalorder %s1149_s28, %s1223_s0  ;;  %p968_p8 = scmp.lt.s32.totalorder %s966_s12, %s961_s21 }
  0x31   : > { %p964_p11 = pnand %p963_p10, %p962_p9 }
  0x32   : > { %p969_p0 = por %p968_p8, %p967_p13 }
  0x33   : > { %p965_p12 = pneg %p964_p11 }
  0x35   : > { %p970_p2 = pnand %p969_p0, %p965_p12 }
  0x37   : > { %973 = shalt.err (!%p970_p2)
}
  0x38   : > { %s974_s16 = scalar_lea.vmem %s1155_s30, 256  ;;  %s1033_s18 = smov [#allocation2]  }
  0x39   : > { %p975_p3 = scmp.ne.s32.totalorder %s1155_s30, %s974_s16  ;;  %s979_s25 = sshll.u32 %s1033_s18, 4  ;;  %s980_s25 = int_to_ptr.vmem [resolvable:$false] %s979_s25 }
  0x3a   : > { %s981_s26 = scalar_lea.vmem %s980_s25, 512  ;;  %p982_p11 = scmp.lt.s32.totalorder %s1155_s30, %s980_s25 }
  0x3b   : > { %p977_p6 = pnand %p975_p3, %p963_p10  ;;  %p983_p1 = scmp.lt.s32.totalorder %s981_s26, %s974_s16 }
  0x3d   : > { %p978_p9 = pneg %p977_p6  ;;  %p984_p4 = por %p983_p1, %p982_p11 }
  0x3f   : > { %p985_p5 = pnand %p984_p4, %p978_p9 }
  0x41   : > { %988 = shalt.err (!%p985_p5)
}
  0x42   : > { %867 = dma.hbm_to_vmem [thread:$0]  (!%p1151_p7), %s1149_s28, 256, %s1155_s30, %s1157_s9, %s1031_s6, %s1031_s6, %s1032_s7  }
  0x43   : > { %p1236_p10 = scmp.ne.s32.totalorder %s1233_s24, 0 }
  0x44   : > { %s230_s27 = sand.u32 (!%p1236_p10), 1, %s1019_s19   ;;  %p1237_p1 = scmp.ne.s32.totalorder (!%p1236_p10), %s1232_s23, 0 }
  0x45   : > { %228 = sbr.rel (%p1236_p10) target bundleno = 517 (0x205), region = 40  ;;  %s1184_s29 = sshll.u32 (!%p1236_p10), %s230_s27, 4 }
  0x46   : > { %s231_s21 = scalar_lea.sflag (!%p1236_p10), [#allocation3], %s230_s27  ;;  %s234_s10 = scalar_lea.vmem (!%p1236_p10), [#allocation2], %s1184_s29 }
  0x4a   : > { %1006 = dma.done.wait (%p1237_p1), %s231_s21, 256  }
  0x4b   : > { %1008 = vsyncadd (%p1237_p1), %s231_s21, 4294967040  ;;  %p1238_p4 = scmp.eq.s32.totalorder %s1083_s22, 0 }
  0x4d   : > { %1010 = dma.done.wait (%p1238_p4), [#allocation5], 8192   ;;  %p1239_p5 = pmov %p1238_p4 }
  0x4e   : > { %v307_v0 = vld [vmem:[#allocation4 + $0xf8] sm:$0xff]  ;;  %v306_v2 = vld [vmem:[#allocation4 + $0xf0] sm:$0xff]  ;;  %v305_v5 = vld [vmem:[#allocation4 + $0xe8] sm:$0xff]  ;;  %vm344_vm0 = vcmask 1046528   ;;  %vm350_vm1 = vcmask 1045504   ;;  %p269_p7 = scmp.lt.s32.totalorder %s1083_s22, 1 }
  0x4f   : > { %1012 = vsyncadd (%p1239_p5), [#allocation5], 4294959104  ;;  %v291_v1 = vld [vmem:[#allocation4 + $0x78] sm:$0xff]  ;;  %703 = vmatprep.subr.mxu0 %v307_v0  ;;  %v290_v3 = vld [vmem:[#allocation4 + $0x70] sm:$0xff] }
  0x50   : > { %v323_v4 = vld [vmem:[#allocation4 + $0x178] sm:$0xff]  ;;  %704 = vmatpush3.msra.mxu0 %v291_v1  ;;  %v322_v6 = vld [vmem:[#allocation4 + $0x170] sm:$0xff]  ;;  %v289_v7 = vld [vmem:[#allocation4 + $0x68] sm:$0xff]  ;;  %s1245_s22 = smov (!%p269_p7, %s1083_s22), 1 }
  0x51   : > { %777 = vmatprep.subr.mxu1 %v323_v4  ;;  %705 = vmatprep.subr.mxu0 %v306_v2  ;;  %v321_v8 = vld [vmem:[#allocation4 + $0x168] sm:$0xff]  ;;  %v304_v9 = vld [vmem:[#allocation4 + $0xe0] sm:$0xff]  ;;  %v303_v12 = vld [vmem:[#allocation4 + $0xd8] sm:$0xff]  ;;  %s702_s6 = sshll.u32 %s1245_s22, 4 }
  0x52   : > { %778 = vmatpush3.msra.mxu1 %v323_v4  ;;  %706 = vmatpush3.msra.mxu0 %v290_v3  ;;  %v288_v10 = vld [vmem:[#allocation4 + $0x60] sm:$0xff]  ;;  %v287_v13 = vld [vmem:[#allocation4 + $0x58] sm:$0xff]  ;;  %v302_v15 = vld [vmem:[#allocation4 + $0xd0] sm:$0xff]  ;;  %s273_s9 = scalar_lea.vmem %s1228_s5, %s702_s6 }
  0x53   : > { %779 = vmatprep.subr.mxu1 %v322_v6  ;;  %707 = vmatprep.subr.mxu0 %v305_v5  ;;  %v320_v11 = vld [vmem:[#allocation4 + $0x160] sm:$0xff]  ;;  %v319_v14 = vld [vmem:[#allocation4 + $0x158] sm:$0xff]  ;;  %v286_v16 = vld [vmem:[#allocation4 + $0x50] sm:$0xff] }
  0x54   : > { %780 = vmatpush3.msra.mxu1 %v322_v6  ;;  %708 = vmatpush3.msra.mxu0 %v289_v7  ;;  %v318_v17 = vld [vmem:[#allocation4 + $0x150] sm:$0xff]  ;;  %v301_v18 = vld [vmem:[#allocation4 + $0xc8] sm:$0xff]  ;;  %v300_v21 = vld [vmem:[#allocation4 + $0xc0] sm:$0xff] }
  0x55   : > { %781 = vmatprep.subr.mxu1 %v321_v8  ;;  %709 = vmatprep.subr.mxu0 %v304_v9  ;;  %v285_v19 = vld [vmem:[#allocation4 + $0x48] sm:$0xff]  ;;  %v284_v22 = vld [vmem:[#allocation4 + $0x40] sm:$0xff]  ;;  %v299_v24 = vld [vmem:[#allocation4 + $0xb8] sm:$0xff] }
  0x56   : > { %782 = vmatpush3.msra.mxu1 %v321_v8  ;;  %710 = vmatpush3.msra.mxu0 %v288_v10  ;;  %v317_v20 = vld [vmem:[#allocation4 + $0x148] sm:$0xff]  ;;  %v316_v23 = vld [vmem:[#allocation4 + $0x140] sm:$0xff]  ;;  %v283_v25 = vld [vmem:[#allocation4 + $0x38] sm:$0xff] }
  0x57   : > { %783 = vmatprep.subr.mxu1 %v320_v11  ;;  %711 = vmatprep.subr.mxu0 %v303_v12  ;;  %v315_v26 = vld [vmem:[#allocation4 + $0x138] sm:$0xff]  ;;  %v298_v27 = vld [vmem:[#allocation4 + $0xb0] sm:$0xff]  ;;  %v297_v30 = vld [vmem:[#allocation4 + $0xa8] sm:$0xff] }
  0x58   : > { %784 = vmatpush3.msra.mxu1 %v320_v11  ;;  %712 = vmatpush3.msra.mxu0 %v287_v13  ;;  %v282_v28 = vld [vmem:[#allocation4 + $0x30] sm:$0xff]  ;;  %v281_v31 = vld [vmem:[#allocation4 + $0x28] sm:$0xff]  ;;  %v296_v35 = vld [vmem:[#allocation4 + $0xa0] sm:$0xff] }
  0x59   : > { %785 = vmatprep.subr.mxu1 %v319_v14  ;;  %713 = vmatprep.subr.mxu0 %v302_v15  ;;  %v314_v29 = vld [vmem:[#allocation4 + $0x130] sm:$0xff]  ;;  %v313_v32 = vld [vmem:[#allocation4 + $0x128] sm:$0xff]  ;;  %v280_v36 = vld [vmem:[#allocation4 + $0x20] sm:$0xff] }
  0x5a   : > { %786 = vmatpush3.msra.mxu1 %v319_v14  ;;  %714 = vmatpush3.msra.mxu0 %v286_v16  ;;  %v274_v33 = vld [vmem:[%s234_s10] sm:$0xff]  ;;  %v275_v34 = vld [vmem:[%s234_s10 + $0x8] sm:$0xff] }
  0x5b   : > { %787 = vmatprep.subr.mxu1 %v318_v17  ;;  %715 = vmatprep.subr.mxu0 %v301_v18  ;;  %v312_v37 = vld [vmem:[#allocation4 + $0x120] sm:$0xff]  ;;  %v295_v38 = vld [vmem:[#allocation4 + $0x98] sm:$0xff]  ;;  %v345_v39 = vrot.slane %v274_v33, 1  ;;  %v346_v40 = vrot.slane %v275_v34, 1  ;;  %v294_v43 = vld [vmem:[#allocation4 + $0x90] sm:$0xff]  ;;  %v351_v51 = vrot.slane %v274_v33, 2 }
  0x5c   : > { %788 = vmatpush3.msra.mxu1 %v318_v17  ;;  %716 = vmatpush3.msra.mxu0 %v285_v19  ;;  %v279_v41 = vld [vmem:[#allocation4 + $0x18] sm:$0xff]  ;;  %v278_v44 = vld [vmem:[#allocation4 + $0x10] sm:$0xff]  ;;  %v293_v46 = vld [vmem:[#allocation4 + $0x88] sm:$0xff]  ;;  %v352_v52 = vrot.slane %v275_v34, 2 }
  0x5d   : > { %789 = vmatprep.subr.mxu1 %v317_v20  ;;  %717 = vmatprep.subr.mxu0 %v300_v21  ;;  %v311_v42 = vld [vmem:[#allocation4 + $0x118] sm:$0xff]  ;;  %v310_v45 = vld [vmem:[#allocation4 + $0x110] sm:$0xff]  ;;  %v347_v47 = vsel %vm344_vm0, %v345_v39, %v346_v40  ;;  %v277_v48 = vld [vmem:[#allocation4 + $0x8] sm:$0xff] }
  0x5e   : > { %790 = vmatpush3.msra.mxu1 %v317_v20  ;;  %718 = vmatpush3.msra.mxu0 %v284_v22  ;;  %v292_v49 = vld [vmem:[#allocation4 + $0x80] sm:$0xff]  ;;  %v309_v50 = vld [vmem:[#allocation4 + $0x108] sm:$0xff]  ;;  %v353_v55 = vsel %vm350_vm1, %v351_v51, %v352_v52  ;;  %v339_v56 = vld [vmem:[#allocation6 + $0x78] sm:$0xff] }
  0x5f   : > { %791 = vmatprep.subr.mxu1 %v316_v23  ;;  %719 = vmatprep.subr.mxu0 %v299_v24  ;;  %v276_v53 = vld [vmem:[#allocation4] sm:$0xff]  ;;  %v338_v57 = vld [vmem:[#allocation6 + $0x70] sm:$0xff]  ;;  %v337_v58 = vld [vmem:[#allocation6 + $0x68] sm:$0xff] }
  0x60   : > { %792 = vmatpush3.msra.mxu1 %v316_v23  ;;  %720 = vmatpush3.msra.mxu0 %v283_v25  ;;  %v308_v54 = vld [vmem:[#allocation4 + $0x100] sm:$0xff]  ;;  %v335_v60 = vld [vmem:[#allocation6 + $0x58] sm:$0xff]  ;;  %v334_v61 = vld [vmem:[#allocation6 + $0x50] sm:$0xff] }
  0x61   : > { %793 = vmatprep.subr.mxu1 %v315_v26  ;;  %721 = vmatprep.subr.mxu0 %v298_v27  ;;  %v336_v59 = vld [vmem:[#allocation6 + $0x60] sm:$0xff]  ;;  %v333_v62 = vld [vmem:[#allocation6 + $0x48] sm:$0xff]  ;;  %v331_v0 = vld [vmem:[#allocation6 + $0x38] sm:$0xff] }
  0x62   : > { %794 = vmatpush3.msra.mxu1 %v315_v26  ;;  %722 = vmatpush3.msra.mxu0 %v282_v28  ;;  %v332_v63 = vld [vmem:[#allocation6 + $0x40] sm:$0xff]  ;;  %v330_v1 = vld [vmem:[#allocation6 + $0x30] sm:$0xff]  ;;  %v329_v2 = vld [vmem:[#allocation6 + $0x28] sm:$0xff] }
  0x63   : > { %795 = vmatprep.subr.mxu1 %v314_v29  ;;  %723 = vmatprep.subr.mxu0 %v297_v30  ;;  %v328_v3 = vld [vmem:[#allocation6 + $0x20] sm:$0xff]  ;;  %v327_v4 = vld [vmem:[#allocation6 + $0x18] sm:$0xff]  ;;  %v326_v5 = vld [vmem:[#allocation6 + $0x10] sm:$0xff] }
  0x64   : > { %796 = vmatpush3.msra.mxu1 %v314_v29  ;;  %724 = vmatpush3.msra.mxu0 %v281_v31  ;;  %v325_v6 = vld [vmem:[#allocation6 + $0x8] sm:$0xff]  ;;  %v324_v7 = vld [vmem:[#allocation6] sm:$0xff] }
  0x65   : > { %797 = vmatprep.subr.mxu1 %v313_v32  ;;  %725 = vmatprep.subr.mxu0 %v296_v35  ;;  %v697_v10 = vld [vmem:[%s1225_s2] ss:$0 sm:$0xff] }
  0x66   : > { %798 = vmatpush3.msra.mxu1 %v313_v32  ;;  %726 = vmatpush3.msra.mxu0 %v280_v36  ;;  %v698_v23 = vld [vmem:[%s1227_s4] ss:$0 sm:$0xff] }
  0x67   : > { %799 = vmatprep.subr.mxu1 %v312_v37  ;;  %727 = vmatprep.subr.mxu0 %v295_v38 }
  0x68   : > { %800 = vmatpush3.msra.mxu1 %v312_v37  ;;  %728 = vmatpush3.msra.mxu0 %v279_v41 }
  0x69   : > { %801 = vmatprep.subr.mxu1 %v311_v42  ;;  %729 = vmatprep.subr.mxu0 %v294_v43 }
  0x6a   : > { %802 = vmatpush3.msra.mxu1 %v311_v42  ;;  %730 = vmatpush3.msra.mxu0 %v278_v44 }
  0x6b   : > { %803 = vmatprep.subr.mxu1 %v310_v45  ;;  %731 = vmatprep.subr.mxu0 %v293_v46 }
  0x6c   : > { %426 = vmatprep.mubr.f32.mxu0 %v347_v47  ;;  %732 = vmatpush3.msra.mxu0 %v277_v48 }
  0x6d   : > { %804 = vmatpush3.msra.mxu1 %v310_v45  ;;  %733 = vmatprep.subr.mxu0 %v292_v49 }
  0x6e   : > { %805 = vmatprep.subr.mxu1 %v309_v50  ;;  %734 = vmatpush3.msra.mxu0 %v276_v53 }
  0x6f   : > { %806 = vmatpush3.msra.mxu1 %v309_v50  ;;  %427 = vmatmul.mubr.f32.vlgmr.msra.gmra.mxu0 %v274_v33 }
  0x70   : > { %807 = vmatprep.subr.mxu1 %v308_v54  ;;  %431 = vmatprep.mubr.f32.mxu0 %v346_v40 }
  0x71   : > { %808 = vmatpush3.msra.mxu1 %v308_v54  ;;  %809 = vmatprep.mubr.f32.mxu1 %v353_v55 }
  0x72   : > { %812 = vmatprep.subr.mxu0 %v339_v56  ;;  %810 = vmatmul.mubr.f32.vlgmr.msra.gmra.mxu1 %v352_v52 }
  0x73   : > { %813 = vmatpush3.msra.mxu0 %v339_v56 }
  0x74   : > { %432 = vmatmul.mubr.f32.gmra.mxu0 %v275_v34  ;;  %814 = vmatprep.subr.mxu0 %v338_v57 }
  0x75   : > { %815 = vmatpush3.msra.mxu0 %v338_v57 }
  0x76   : > { %816 = vmatprep.subr.mxu0 %v337_v58 }
  0x77   : > { %817 = vmatpush3.msra.mxu0 %v337_v58 }
  0x78   : > { %818 = vmatprep.subr.mxu0 %v336_v59 }
  0x79   : > { %819 = vmatpush3.msra.mxu0 %v336_v59 }
  0x7a   : > { %820 = vmatprep.subr.mxu0 %v335_v60 }
  0x7b   : > { %821 = vmatpush3.msra.mxu0 %v335_v60 }
  0x7c   : > { %822 = vmatprep.subr.mxu0 %v334_v61 }
  0x7d   : > { %823 = vmatpush3.msra.mxu0 %v334_v61 }
  0x7e   : > { %824 = vmatprep.subr.mxu0 %v333_v62 }
  0x7f   : > { %825 = vmatpush3.msra.mxu0 %v333_v62 }
  0x80   : > { %826 = vmatprep.subr.mxu0 %v332_v63 }
  0x81   : > { %827 = vmatpush3.msra.mxu0 %v332_v63 }
  0x82   : > { %828 = vmatprep.subr.mxu0 %v331_v0 }
  0x83   : > { %829 = vmatpush3.msra.mxu0 %v331_v0 }
  0x84   : > { %830 = vmatprep.subr.mxu0 %v330_v1 }
  0x85   : > { %831 = vmatpush3.msra.mxu0 %v330_v1 }
  0x86   : > { %832 = vmatprep.subr.mxu0 %v329_v2 }
  0x87   : > { %833 = vmatpush3.msra.mxu0 %v329_v2 }
  0x88   : > { %834 = vmatprep.subr.mxu0 %v328_v3 }
  0x89   : > { %835 = vmatpush3.msra.mxu0 %v328_v3 }
  0x8a   : > { %836 = vmatprep.subr.mxu0 %v327_v4 }
  0x8b   : > { %837 = vmatpush3.msra.mxu0 %v327_v4 }
  0x8c   : > { %838 = vmatprep.subr.mxu0 %v326_v5 }
  0x8d   : > { %839 = vmatpush3.msra.mxu0 %v326_v5 }
  0x8e   : > { %840 = vmatprep.subr.mxu0 %v325_v6 }
  0x8f   : > { %841 = vmatpush3.msra.mxu0 %v325_v6 }
  0x90   : > { %842 = vmatprep.subr.mxu0 %v324_v7 }
  0x91   : > { %843 = vmatpush3.msra.mxu0 %v324_v7 }
 0x12f   : > { %v735_v8 = vpop.f32.mrf.mxu0 }
 0x131   : > { %v736_v9 = vpop.f32.mrf.mxu0 }
 0x132   : > { %v737_v11 = vadd.f32 %v736_v9, %v735_v8  ;;  %v811_v12 = vpop.f32.mrf.mxu1 }
 0x134   : > { %v738_v13 = vpop.f32.mrf.mxu0  ;;  %v429_v14 = vadd.f32 %v737_v11, %v697_v10  ;;  %v503_v15 = vpop.f32.mrf.mxu1 }
 0x136   : > { %v739_v16 = vpop.f32.mrf.mxu0  ;;  %v504_v18 = vadd.f32 %v503_v15, %v429_v14 }
 0x137   : > { %v740_v17 = vadd.f32 %v739_v16, %v738_v13 }
 0x138   : > { %v512_v20 = vmax.f32 %v504_v18, 0.0 }
 0x139   : > { %v434_v19 = vadd.f32 %v740_v17, %v697_v10 }
 0x13a   : > { %844 = vmatprep.mubr.f32.mxu0 %v512_v20 }
 0x13b   : > { %v509_v21 = vadd.f32 %v811_v12, %v434_v19 }
 0x13d   : > { %v513_v22 = vmax.f32 %v509_v21, 0.0 }
 0x13f   : > { %845 = vmatmul.mubr.f32.vlgmr.msra.gmra.mxu0 %v513_v22 }
 0x1ff   : > { %v846_v24 = vpop.f32.mrf.mxu0 }
 0x200   : > { %v592_v25 = vadd.f32 %v846_v24, %v698_v23 }
 0x201   : > { %v586_v26 = vpop.f32.mrf.mxu0 }
 0x202   : > { %596 = vst [vmem:[%s273_s9 + $0x8] sm:$0x3f] %v592_v25  ;;  %v587_v27 = vadd.f32 %v698_v23, %v586_v26 }
 0x204   : > { %595 = vst [vmem:[%s273_s9] sm:$0xff] %v587_v27 }
 0x205 PF: > { %p16_p12 = scmp.ge.s32.totalorder %s1132_s13, 4   ;;  %s1240_s18 = smov %s1019_s19 }
 0x206   : > { %s1241_s19 = smov %s1023_s20  ;;  %s1242_s20 = smov %s1143_s17 }
 0x207   : > { %s1243_s21 = smov %s1132_s13  ;;  %18 = sbr.rel (!%p16_p12) target bundleno = 4 (0x4), region = 88 }
 0x20c   :  { %618 = vsyncpa [#allocation3], 1 }
 0x20d   :  { %620 = vsyncpa [#allocation3 + $0x1], 1 }
 0x20e   :  { %621 = vsyncpa [#allocation5], 1 }

</bundles_post_ra>
